<compile_context>
chip_gen: v5e
topology: v5e:2x2
jax: 0.10.0
libtpu: 0.0.40
codegen_flags: <defaults>
</compile_context>

<pallas_src>
import functools

import jax
import jax.numpy as jnp
import numpy as np
from jax import lax
from jax.experimental import pallas as pl
from jax.experimental.pallas import tpu as pltpu

GROUPS = 32      # from the PyTorch module
EPS = 1e-5       # nn.GroupNorm default eps


def up_conv_kernel(x_ref, w_ref, bt_ref, g_ref, be_ref, bvar_ref,
                   mcg_ref, mgc_ref, o_ref, acc_ref,
                   *, Hin, Win, Cin, Cout, G):
    """One batch element per grid step.

    x_ref   : (1, Hin+2, Win+2, Cin)   un-upsampled NHWC input, 1-px zero pad
    w_ref   : (2, 6*Cin, 2*Cout)       fused parity weights (a-parity major);
                                       K-block order = (row offset rel, col offset)
    bt_ref  : (1, 2*Cout)  conv bias minus its per-group mean, tiled over b (f32)
    g_ref   : (1, 2*Cout)  GroupNorm gamma tiled over b (f32)
    be_ref  : (1, 2*Cout)  GroupNorm beta tiled over b (f32)
    bvar_ref: (1, G)       per-group mean of (bias - group-mean)^2 (f32)
    mcg_ref : (2*Cout, G)  doubled-channel -> group indicator (f32)
    mgc_ref : (G, 2*Cout)  group -> doubled-channel indicator (f32)
    o_ref   : (1, Hin, 2, Win, 2*Cout) output; row-major == (2Hin, 2Win, Cout)
    acc_ref : (2, HW, 2*Cout)          compute-dtype VMEM scratch (conv results)
    """
    Cpg = Cout // G
    HW = Hin * Win
    n_pix = 4.0 * HW                    # (2Hin)*(2Win) output pixels
    inv_n = 1.0 / (n_pix * Cpg)

    xp = x_ref[0]                       # (Hin+2, Win+2, Cin), compute dtype

    # ---- 9 unique shifted slabs of the padded, UN-upsampled input ----------
    slab = [[xp[r:r + Hin, c:c + Win, :].reshape(HW, Cin) for c in range(3)]
            for r in range(3)]
    # K-stacked LHS per output-row parity (row offsets {a, a+1}, all 3 col offs)
    lhs = [jnp.concatenate(slab[0] + slab[1], axis=-1),   # a = 0 -> x rows {i-1, i}
           jnp.concatenate(slab[1] + slab[2], axis=-1)]   # a = 1 -> x rows {i, i+1}

    ones_row = jnp.ones((1, HW), jnp.float32)
    s = jnp.zeros((1, 2 * Cout), jnp.float32)   # per-(b,channel) sums of conv out
    q = jnp.zeros((1, 2 * Cout), jnp.float32)   # ... sums of squares

    # ---- pass 1: one fused MXU matmul per row parity; stats via MXU --------
    for a in range(2):
        z = jnp.dot(lhs[a], w_ref[a], preferred_element_type=jnp.float32)
        acc_ref[a] = z.astype(acc_ref.dtype)
        s = s + jnp.dot(ones_row, z, preferred_element_type=jnp.float32)
        q = q + jnp.dot(ones_row, z * z, preferred_element_type=jnp.float32)

    # ---- GroupNorm statistics (bias folded analytically; all tiny f32) -----
    mcg = mcg_ref[...]                   # (2*Cout, G)
    mgc = mgc_ref[...]                   # (G, 2*Cout)
    bt = bt_ref[...]                     # (1, 2*Cout) mean-removed bias

    sum_g = jnp.dot(s, mcg, preferred_element_type=jnp.float32)       # (1, G)
    sq_g = jnp.dot(q, mcg, preferred_element_type=jnp.float32)        # (1, G)
    cross_g = jnp.dot(s * bt, mcg, preferred_element_type=jnp.float32)

    mean_g = sum_g * inv_n                                   # E[z + b~] per group
    e2_g = (sq_g + 2.0 * cross_g) * inv_n + bvar_ref[...]    # E[(z + b~)^2]
    var_g = jnp.maximum(e2_g - mean_g * mean_g, 0.0)
    rstd_g = lax.rsqrt(var_g + EPS)

    scale = jnp.dot(rstd_g, mgc, preferred_element_type=jnp.float32) * g_ref[...]
    mean_c = jnp.dot(mean_g, mgc, preferred_element_type=jnp.float32)
    shift = (bt - mean_c) * scale + be_ref[...]

    # ---- pass 2: normalise + ReLU; results already lane-dense (2*Cout) -----
    for a in range(2):
        y = jnp.maximum(acc_ref[a] * scale + shift, 0.0)
        o_ref[0, :, a, :, :] = y.reshape(Hin, Win, 2 * Cout).astype(o_ref.dtype)


def _fused_weights(w_hwio, compute_dtype):
    """Fold upsample-by-2 + both column parities into (2, 6*Cin, 2*Cout) weights.

    For output-row parity a, K blocks are ordered (row offset rel 0..1) major,
    (col offset 0..2) minor; N blocks are [b=0 | b=1].  Built with exact f32 adds.
    """
    w = w_hwio.astype(jnp.float32)              # (3, 3, Cin, Cout) = [ky, kx]
    Cin, Cout = w.shape[2], w.shape[3]
    zero = jnp.zeros((Cin, Cout), jnp.float32)
    rw = [[w[0], w[1] + w[2]],                  # a = 0 -> x rows {i-1, i}
          [w[0] + w[1], w[2]]]                  # a = 1 -> x rows {i, i+1}
    wf = []
    for a in range(2):
        kblocks = []
        for dy_rel in range(2):
            r = rw[a][dy_rel]                   # (3, Cin, Cout) over kx
            col_b0 = [r[0], r[1] + r[2], zero]  # output col 2j   <- x cols {j-1, j}
            col_b1 = [zero, r[0] + r[1], r[2]]  # output col 2j+1 <- x cols {j, j+1}
            for dc in range(3):
                kblocks.append(jnp.concatenate([col_b0[dc], col_b1[dc]], axis=-1))
        wf.append(jnp.concatenate(kblocks, axis=0))        # (6*Cin, 2*Cout)
    return jnp.stack(wf, axis=0).astype(compute_dtype)     # (2, 6*Cin, 2*Cout)


def _gn_constants(bias, gamma, beta, Cout):
    """Mean-removed bias (tiled over the two W-parities) + GN indicator matrices."""
    Cpg = Cout // GROUPS
    b = bias.astype(jnp.float32)
    b_gmean = jnp.mean(b.reshape(GROUPS, Cpg), axis=1)               # (G,)
    bt = b - jnp.repeat(b_gmean, Cpg)                                # b~ (group-mean 0)
    bvar_g = jnp.mean((bt * bt).reshape(GROUPS, Cpg), axis=1).reshape(1, GROUPS)
    bt2 = jnp.tile(bt.reshape(1, Cout), (1, 2))                      # (1, 2*Cout)
    g2 = jnp.tile(gamma.reshape(1, Cout).astype(jnp.float32), (1, 2))
    be2 = jnp.tile(beta.reshape(1, Cout).astype(jnp.float32), (1, 2))
    grp = jnp.tile(jnp.arange(Cout, dtype=jnp.int32) // Cpg, 2)      # (2*Cout,)
    m_cg = (grp[:, None] == jnp.arange(GROUPS, dtype=jnp.int32)[None, :]
            ).astype(jnp.float32)                                    # (2*Cout, G)
    m_gc = jnp.transpose(m_cg)                                       # (G, 2*Cout)
    return bt2, g2, be2, bvar_g, m_cg, m_gc


def up_conv_forward_nhwc(x_nhwc, w_hwio, bias, gamma, beta, *,
                         compute_dtype=jnp.bfloat16):
    """up_conv forward, NHWC in / NHWC out (preferred: no layout HBM passes)."""
    N, Hin, Win, Cin = x_nhwc.shape
    Cout = w_hwio.shape[-1]
    assert Cout % GROUPS == 0
    HW = Hin * Win

    wf = _fused_weights(w_hwio, compute_dtype)
    bt2, g2, be2, bvar_g, m_cg, m_gc = _gn_constants(bias, gamma, beta, Cout)

    # Only prep pass: 1-px zero pad (+ optional bf16 cast) of the small,
    # UN-upsampled input. The 2x upsampled intermediate never exists.
    x_pad = jnp.pad(x_nhwc, ((0, 0), (1, 1), (1, 1), (0, 0))).astype(compute_dtype)

    kern = functools.partial(up_conv_kernel, Hin=Hin, Win=Win, Cin=Cin,
                             Cout=Cout, G=GROUPS)

    in_sz = jnp.dtype(compute_dtype).itemsize
    out_sz = jnp.dtype(x_nhwc.dtype).itemsize
    est_vmem = (
        2 * (Hin + 2) * (Win + 2) * max(Cin, 128) * in_sz     # input block x2 bufs
        + 2 * (4 * HW) * Cout * out_sz                        # output block x2 bufs
        + 2 * HW * 2 * Cout * in_sz                           # acc scratch
        + 2 * HW * max(6 * Cin, 128) * in_sz                  # LHS temporaries
        + HW * 2 * Cout * 4                                   # f32 matmul result
        + 2 * 2 * 6 * Cin * 2 * Cout * in_sz                  # fused weights x2 bufs
        + 2 * (4 * 2 * Cout + 2 * 2 * Cout * GROUPS) * 4      # GN consts x2 bufs
    )
    try:
        vmem_cap = int(pltpu.get_tpu_info().vmem_capacity_bytes)
    except Exception:
        vmem_cap = 64 * 1024 * 1024          # conservative (v7x per-core VMEM)
    vmem_limit = int(min(max(int(1.5 * est_vmem), 32 * 1024 * 1024),
                         int(0.85 * vmem_cap)))

    out5 = pl.pallas_call(
        kern,
        out_shape=jax.ShapeDtypeStruct((N, Hin, 2, Win, 2 * Cout),
                                       x_nhwc.dtype),
        grid=(N,),
        in_specs=[
            pl.BlockSpec((1, Hin + 2, Win + 2, Cin), lambda n: (n, 0, 0, 0)),
            pl.BlockSpec((2, 6 * Cin, 2 * Cout), lambda n: (0, 0, 0)),
            pl.BlockSpec((1, 2 * Cout), lambda n: (0, 0)),
            pl.BlockSpec((1, 2 * Cout), lambda n: (0, 0)),
            pl.BlockSpec((1, 2 * Cout), lambda n: (0, 0)),
            pl.BlockSpec((1, GROUPS), lambda n: (0, 0)),
            pl.BlockSpec((2 * Cout, GROUPS), lambda n: (0, 0)),
            pl.BlockSpec((GROUPS, 2 * Cout), lambda n: (0, 0)),
        ],
        out_specs=pl.BlockSpec((1, Hin, 2, Win, 2 * Cout),
                               lambda n: (n, 0, 0, 0, 0)),
        scratch_shapes=[pltpu.VMEM((2, HW, 2 * Cout), compute_dtype)],
        compiler_params=pltpu.CompilerParams(
            dimension_semantics=("parallel",),
            vmem_limit_bytes=vmem_limit),
    )(x_pad, wf, bt2, g2, be2, bvar_g, m_cg, m_gc)

    # (N, Hin, 2, Win, 2, Cout) row-major == NHWC (N, 2Hin, 2Win, Cout):
    # pure metadata reshape, no extra HBM pass.
    return out5.reshape(N, 2 * Hin, 2 * Win, Cout)


def up_conv_forward(x_nchw, w_hwio, bias, gamma, beta, *,
                    compute_dtype=jnp.bfloat16):
    """NCHW API matching the PyTorch module. The two transposes here are pure
    layout glue; callers that can consume NHWC should call
    `up_conv_forward_nhwc` directly and skip both HBM passes."""
    x_nhwc = jnp.transpose(x_nchw, (0, 2, 3, 1))
    out_nhwc = up_conv_forward_nhwc(x_nhwc, w_hwio, bias, gamma, beta,
                                    compute_dtype=compute_dtype)
    return jnp.transpose(out_nhwc, (0, 3, 1, 2))


def up_conv_reference(x_nchw, w_hwio, bias, gamma, beta):
    """Pure-JAX reference matching the PyTorch module semantics."""
    xu = jnp.repeat(jnp.repeat(x_nchw, 2, axis=2), 2, axis=3)
    y = lax.conv_general_dilated(
        xu, w_hwio, window_strides=(1, 1), padding='SAME',
        dimension_numbers=('NCHW', 'HWIO', 'NCHW'),
        precision=lax.Precision.HIGHEST)
    y = y + bias[None, :, None, None]
    N, C, H, W = y.shape
    yg = y.reshape(N, GROUPS, C // GROUPS, H, W)
    mean = yg.mean(axis=(2, 3, 4), keepdims=True)
    var = yg.var(axis=(2, 3, 4), keepdims=True)
    yn = ((yg - mean) / jnp.sqrt(var + EPS)).reshape(N, C, H, W)
    yn = yn * gamma[None, :, None, None] + beta[None, :, None, None]
    return jnp.maximum(yn, 0.0)


if __name__ == "__main__":
    # small shapes consistent with the module (out_ch must be divisible by 32)
    N, Cin, Cout, Hin, Win = 2, 16, 64, 8, 8

    key = jax.random.PRNGKey(0)
    k_x, k_w, k_b, k_g, k_be = jax.random.split(key, 5)

    x = jax.random.normal(k_x, (N, Cin, Hin, Win), jnp.float32)
    w_hwio = 0.1 * jax.random.normal(k_w, (3, 3, Cin, Cout), jnp.float32)
    bias = 0.1 * jax.random.normal(k_b, (Cout,), jnp.float32)
    gamma = 1.0 + 0.1 * jax.random.normal(k_g, (Cout,), jnp.float32)
    beta = 0.1 * jax.random.normal(k_be, (Cout,), jnp.float32)

    ref = jax.block_until_ready(up_conv_reference(x, w_hwio, bias, gamma, beta))

    # exact-math path (f32 MXU operands, f32 scratch): tight tolerance
    out_f32 = jax.block_until_ready(
        up_conv_forward(x, w_hwio, bias, gamma, beta,
                        compute_dtype=jnp.float32))
    assert out_f32.shape == (N, Cout, 2 * Hin, 2 * Win)
    np.testing.assert_allclose(np.asarray(out_f32), np.asarray(ref),
                               rtol=2e-3, atol=2e-3)

    # default perf path (bf16 MXU operands + bf16 scratch, f32 accumulation/GN)
    out_bf16 = jax.block_until_ready(
        up_conv_forward(x, w_hwio, bias, gamma, beta,
                        compute_dtype=jnp.bfloat16))
    np.testing.assert_allclose(np.asarray(out_bf16), np.asarray(ref),
                               rtol=4e-2, atol=4e-2)

    print("KERNEL_OK")
</pallas_src>

<mosaic_0001>
module attributes {stable_mosaic.version = 11 : i64} {
  func.func @up_conv_kernel(%arg0: i32, %arg1: memref<1x10x10x16xf32, #tpu.memory_space<vmem>>, %arg2: memref<2x96x128xf32, #tpu.memory_space<vmem>>, %arg3: memref<1x128xf32, #tpu.memory_space<vmem>>, %arg4: memref<1x128xf32, #tpu.memory_space<vmem>>, %arg5: memref<1x128xf32, #tpu.memory_space<vmem>>, %arg6: memref<1x32xf32, #tpu.memory_space<vmem>>, %arg7: memref<128x32xf32, #tpu.memory_space<vmem>>, %arg8: memref<32x128xf32, #tpu.memory_space<vmem>>, %arg9: memref<1x8x2x8x128xf32, #tpu.memory_space<vmem>>, %arg10: memref<2x64x128xf32, #tpu.memory_space<vmem>>) attributes {dimension_semantics = [#tpu.dimension_semantics<parallel>], iteration_bounds = array<i64: 2>, scalar_prefetch = 0 : i64, scratch_operands = 1 : i64, tpu.core_type = #tpu.core_type<tc>, window_params = [{transform_indices = @transform_0, window_bounds = array<i64: 1, 10, 10, 16>}, {pipeline_mode = #tpu.pipeline_mode<synchronous>, transform_indices = @transform_1, window_bounds = array<i64: 2, 96, 128>}, {pipeline_mode = #tpu.pipeline_mode<synchronous>, transform_indices = @transform_2, window_bounds = array<i64: 1, 128>}, {pipeline_mode = #tpu.pipeline_mode<synchronous>, transform_indices = @transform_3, window_bounds = array<i64: 1, 128>}, {pipeline_mode = #tpu.pipeline_mode<synchronous>, transform_indices = @transform_4, window_bounds = array<i64: 1, 128>}, {pipeline_mode = #tpu.pipeline_mode<synchronous>, transform_indices = @transform_5, window_bounds = array<i64: 1, 32>}, {pipeline_mode = #tpu.pipeline_mode<synchronous>, transform_indices = @transform_6, window_bounds = array<i64: 128, 32>}, {pipeline_mode = #tpu.pipeline_mode<synchronous>, transform_indices = @transform_7, window_bounds = array<i64: 32, 128>}, {transform_indices = @transform_8, window_bounds = array<i64: 1, 8, 2, 8, 128>}]} {
    %c0 = arith.constant 0 : index
    %c0_0 = arith.constant 0 : index
    %c0_1 = arith.constant 0 : index
    %c0_2 = arith.constant 0 : index
    %0 = vector.load %arg1[%c0, %c0_0, %c0_1, %c0_2] : memref<1x10x10x16xf32, #tpu.memory_space<vmem>>, vector<1x10x10x16xf32>
    %1 = vector.shape_cast %0 : vector<1x10x10x16xf32> to vector<10x10x16xf32>
    %2 = vector.extract_strided_slice %1 {offsets = [0, 0, 0], sizes = [8, 8, 16], strides = [1, 1, 1]} : vector<10x10x16xf32> to vector<8x8x16xf32>
    %3 = vector.shape_cast %2 : vector<8x8x16xf32> to vector<64x16xf32>
    %4 = vector.extract_strided_slice %1 {offsets = [0, 1, 0], sizes = [8, 8, 16], strides = [1, 1, 1]} : vector<10x10x16xf32> to vector<8x8x16xf32>
    %5 = vector.shape_cast %4 : vector<8x8x16xf32> to vector<64x16xf32>
    %6 = vector.extract_strided_slice %1 {offsets = [0, 2, 0], sizes = [8, 8, 16], strides = [1, 1, 1]} : vector<10x10x16xf32> to vector<8x8x16xf32>
    %7 = vector.shape_cast %6 : vector<8x8x16xf32> to vector<64x16xf32>
    %8 = vector.extract_strided_slice %1 {offsets = [1, 0, 0], sizes = [8, 8, 16], strides = [1, 1, 1]} : vector<10x10x16xf32> to vector<8x8x16xf32>
    %9 = vector.shape_cast %8 : vector<8x8x16xf32> to vector<64x16xf32>
    %10 = vector.extract_strided_slice %1 {offsets = [1, 1, 0], sizes = [8, 8, 16], strides = [1, 1, 1]} : vector<10x10x16xf32> to vector<8x8x16xf32>
    %11 = vector.shape_cast %10 : vector<8x8x16xf32> to vector<64x16xf32>
    %12 = vector.extract_strided_slice %1 {offsets = [1, 2, 0], sizes = [8, 8, 16], strides = [1, 1, 1]} : vector<10x10x16xf32> to vector<8x8x16xf32>
    %13 = vector.shape_cast %12 : vector<8x8x16xf32> to vector<64x16xf32>
    %14 = vector.extract_strided_slice %1 {offsets = [2, 0, 0], sizes = [8, 8, 16], strides = [1, 1, 1]} : vector<10x10x16xf32> to vector<8x8x16xf32>
    %15 = vector.shape_cast %14 : vector<8x8x16xf32> to vector<64x16xf32>
    %16 = vector.extract_strided_slice %1 {offsets = [2, 1, 0], sizes = [8, 8, 16], strides = [1, 1, 1]} : vector<10x10x16xf32> to vector<8x8x16xf32>
    %17 = vector.shape_cast %16 : vector<8x8x16xf32> to vector<64x16xf32>
    %18 = vector.extract_strided_slice %1 {offsets = [2, 2, 0], sizes = [8, 8, 16], strides = [1, 1, 1]} : vector<10x10x16xf32> to vector<8x8x16xf32>
    %19 = vector.shape_cast %18 : vector<8x8x16xf32> to vector<64x16xf32>
    %20 = tpu.concatenate %3, %5, %7, %9, %11, %13 in 1 : vector<64x16xf32>, vector<64x16xf32>, vector<64x16xf32>, vector<64x16xf32>, vector<64x16xf32>, vector<64x16xf32> -> vector<64x96xf32>
    %21 = tpu.concatenate %9, %11, %13, %15, %17, %19 in 1 : vector<64x16xf32>, vector<64x16xf32>, vector<64x16xf32>, vector<64x16xf32>, vector<64x16xf32>, vector<64x16xf32> -> vector<64x96xf32>
    %cst = arith.constant 1.000000e+00 : f32
    %22 = vector.broadcast %cst : f32 to vector<1x64xf32>
    %cst_3 = arith.constant 0.000000e+00 : f32
    %23 = vector.broadcast %cst_3 : f32 to vector<1x128xf32>
    %cst_4 = arith.constant 0.000000e+00 : f32
    %24 = vector.broadcast %cst_4 : f32 to vector<1x128xf32>
    %c0_5 = arith.constant 0 : index
    %c0_6 = arith.constant 0 : index
    %c0_7 = arith.constant 0 : index
    %25 = vector.load %arg2[%c0_5, %c0_6, %c0_7] : memref<2x96x128xf32, #tpu.memory_space<vmem>>, vector<1x96x128xf32>
    %26 = vector.shape_cast %25 : vector<1x96x128xf32> to vector<96x128xf32>
    %cst_8 = arith.constant dense<0.000000e+00> : vector<64x128xf32>
    %27 = tpu.matmul %20, %26, %cst_8 {dimension_numbers = #tpu.dot_dimension_numbers<[1], [0], [0], [1], [0, 0, 1, 1], [], []>} : vector<64x96xf32>, vector<96x128xf32>, vector<64x128xf32> -> vector<64x128xf32>
    %c0_9 = arith.constant 0 : index
    %c0_10 = arith.constant 0 : index
    %c0_11 = arith.constant 0 : index
    %28 = vector.load %arg10[%c0_9, %c0_10, %c0_11] : memref<2x64x128xf32, #tpu.memory_space<vmem>>, vector<1x64x128xf32>
    %29 = vector.shape_cast %28 : vector<1x64x128xf32> to vector<64x128xf32>
    %30 = vector.shape_cast %27 : vector<64x128xf32> to vector<1x64x128xf32>
    tpu.vector_store %arg10[%c0_9, %c0_10, %c0_11], %30 {strides = array<i32>} : memref<2x64x128xf32, #tpu.memory_space<vmem>>, vector<1x64x128xf32>,
    %cst_12 = arith.constant dense<0.000000e+00> : vector<1x128xf32>
    %31 = tpu.matmul %22, %27, %cst_12 {dimension_numbers = #tpu.dot_dimension_numbers<[1], [0], [0], [1], [0, 0, 1, 1], [], []>} : vector<1x64xf32>, vector<64x128xf32>, vector<1x128xf32> -> vector<1x128xf32>
    %32 = arith.addf %23, %31 : vector<1x128xf32>
    %33 = arith.mulf %27, %27 : vector<64x128xf32>
    %cst_13 = arith.constant dense<0.000000e+00> : vector<1x128xf32>
    %34 = tpu.matmul %22, %33, %cst_13 {dimension_numbers = #tpu.dot_dimension_numbers<[1], [0], [0], [1], [0, 0, 1, 1], [], []>} : vector<1x64xf32>, vector<64x128xf32>, vector<1x128xf32> -> vector<1x128xf32>
    %35 = arith.addf %24, %34 : vector<1x128xf32>
    %c1 = arith.constant 1 : index
    %c0_14 = arith.constant 0 : index
    %c0_15 = arith.constant 0 : index
    %36 = vector.load %arg2[%c1, %c0_14, %c0_15] : memref<2x96x128xf32, #tpu.memory_space<vmem>>, vector<1x96x128xf32>
    %37 = vector.shape_cast %36 : vector<1x96x128xf32> to vector<96x128xf32>
    %cst_16 = arith.constant dense<0.000000e+00> : vector<64x128xf32>
    %38 = tpu.matmul %21, %37, %cst_16 {dimension_numbers = #tpu.dot_dimension_numbers<[1], [0], [0], [1], [0, 0, 1, 1], [], []>} : vector<64x96xf32>, vector<96x128xf32>, vector<64x128xf32> -> vector<64x128xf32>
    %c1_17 = arith.constant 1 : index
    %c0_18 = arith.constant 0 : index
    %c0_19 = arith.constant 0 : index
    %39 = vector.load %arg10[%c1_17, %c0_18, %c0_19] : memref<2x64x128xf32, #tpu.memory_space<vmem>>, vector<1x64x128xf32>
    %40 = vector.shape_cast %39 : vector<1x64x128xf32> to vector<64x128xf32>
    %41 = vector.shape_cast %38 : vector<64x128xf32> to vector<1x64x128xf32>
    tpu.vector_store %arg10[%c1_17, %c0_18, %c0_19], %41 {strides = array<i32>} : memref<2x64x128xf32, #tpu.memory_space<vmem>>, vector<1x64x128xf32>,
    %cst_20 = arith.constant dense<0.000000e+00> : vector<1x128xf32>
    %42 = tpu.matmul %22, %38, %cst_20 {dimension_numbers = #tpu.dot_dimension_numbers<[1], [0], [0], [1], [0, 0, 1, 1], [], []>} : vector<1x64xf32>, vector<64x128xf32>, vector<1x128xf32> -> vector<1x128xf32>
    %43 = arith.addf %32, %42 : vector<1x128xf32>
    %44 = arith.mulf %38, %38 : vector<64x128xf32>
    %cst_21 = arith.constant dense<0.000000e+00> : vector<1x128xf32>
    %45 = tpu.matmul %22, %44, %cst_21 {dimension_numbers = #tpu.dot_dimension_numbers<[1], [0], [0], [1], [0, 0, 1, 1], [], []>} : vector<1x64xf32>, vector<64x128xf32>, vector<1x128xf32> -> vector<1x128xf32>
    %46 = arith.addf %35, %45 : vector<1x128xf32>
    %c0_22 = arith.constant 0 : index
    %c0_23 = arith.constant 0 : index
    %47 = vector.load %arg7[%c0_22, %c0_23] : memref<128x32xf32, #tpu.memory_space<vmem>>, vector<128x32xf32>
    %c0_24 = arith.constant 0 : index
    %c0_25 = arith.constant 0 : index
    %48 = vector.load %arg8[%c0_24, %c0_25] : memref<32x128xf32, #tpu.memory_space<vmem>>, vector<32x128xf32>
    %c0_26 = arith.constant 0 : index
    %c0_27 = arith.constant 0 : index
    %49 = vector.load %arg3[%c0_26, %c0_27] : memref<1x128xf32, #tpu.memory_space<vmem>>, vector<1x128xf32>
    %cst_28 = arith.constant dense<0.000000e+00> : vector<1x32xf32>
    %50 = tpu.matmul %43, %47, %cst_28 {dimension_numbers = #tpu.dot_dimension_numbers<[1], [0], [0], [1], [0, 0, 1, 1], [], []>} : vector<1x128xf32>, vector<128x32xf32>, vector<1x32xf32> -> vector<1x32xf32>
    %cst_29 = arith.constant dense<0.000000e+00> : vector<1x32xf32>
    %51 = tpu.matmul %46, %47, %cst_29 {dimension_numbers = #tpu.dot_dimension_numbers<[1], [0], [0], [1], [0, 0, 1, 1], [], []>} : vector<1x128xf32>, vector<128x32xf32>, vector<1x32xf32> -> vector<1x32xf32>
    %52 = arith.mulf %43, %49 : vector<1x128xf32>
    %cst_30 = arith.constant dense<0.000000e+00> : vector<1x32xf32>
    %53 = tpu.matmul %52, %47, %cst_30 {dimension_numbers = #tpu.dot_dimension_numbers<[1], [0], [0], [1], [0, 0, 1, 1], [], []>} : vector<1x128xf32>, vector<128x32xf32>, vector<1x32xf32> -> vector<1x32xf32>
    %cst_31 = arith.constant 0.001953125 : f32
    %54 = vector.broadcast %cst_31 : f32 to vector<1x32xf32>
    %55 = arith.mulf %50, %54 : vector<1x32xf32>
    %cst_32 = arith.constant 2.000000e+00 : f32
    %56 = vector.broadcast %cst_32 : f32 to vector<1x32xf32>
    %57 = arith.mulf %56, %53 : vector<1x32xf32>
    %58 = arith.addf %51, %57 : vector<1x32xf32>
    %cst_33 = arith.constant 0.001953125 : f32
    %59 = vector.broadcast %cst_33 : f32 to vector<1x32xf32>
    %60 = arith.mulf %58, %59 : vector<1x32xf32>
    %c0_34 = arith.constant 0 : index
    %c0_35 = arith.constant 0 : index
    %61 = vector.load %arg6[%c0_34, %c0_35] : memref<1x32xf32, #tpu.memory_space<vmem>>, vector<1x32xf32>
    %62 = arith.addf %60, %61 : vector<1x32xf32>
    %63 = arith.mulf %55, %55 : vector<1x32xf32>
    %64 = arith.subf %62, %63 : vector<1x32xf32>
    %cst_36 = arith.constant 0.000000e+00 : f32
    %65 = vector.broadcast %cst_36 : f32 to vector<1x32xf32>
    %66 = arith.maximumf %64, %65 : vector<1x32xf32>
    %cst_37 = arith.constant 9.99999974E-6 : f32
    %67 = vector.broadcast %cst_37 : f32 to vector<1x32xf32>
    %68 = arith.addf %66, %67 : vector<1x32xf32>
    %69 = math.rsqrt %68 : vector<1x32xf32>
    %cst_38 = arith.constant dense<0.000000e+00> : vector<1x128xf32>
    %70 = tpu.matmul %69, %48, %cst_38 {dimension_numbers = #tpu.dot_dimension_numbers<[1], [0], [0], [1], [0, 0, 1, 1], [], []>} : vector<1x32xf32>, vector<32x128xf32>, vector<1x128xf32> -> vector<1x128xf32>
    %c0_39 = arith.constant 0 : index
    %c0_40 = arith.constant 0 : index
    %71 = vector.load %arg4[%c0_39, %c0_40] : memref<1x128xf32, #tpu.memory_space<vmem>>, vector<1x128xf32>
    %72 = arith.mulf %70, %71 : vector<1x128xf32>
    %cst_41 = arith.constant dense<0.000000e+00> : vector<1x128xf32>
    %73 = tpu.matmul %55, %48, %cst_41 {dimension_numbers = #tpu.dot_dimension_numbers<[1], [0], [0], [1], [0, 0, 1, 1], [], []>} : vector<1x32xf32>, vector<32x128xf32>, vector<1x128xf32> -> vector<1x128xf32>
    %74 = arith.subf %49, %73 : vector<1x128xf32>
    %75 = arith.mulf %74, %72 : vector<1x128xf32>
    %c0_42 = arith.constant 0 : index
    %c0_43 = arith.constant 0 : index
    %76 = vector.load %arg5[%c0_42, %c0_43] : memref<1x128xf32, #tpu.memory_space<vmem>>, vector<1x128xf32>
    %77 = arith.addf %75, %76 : vector<1x128xf32>
    %c0_44 = arith.constant 0 : index
    %c0_45 = arith.constant 0 : index
    %c0_46 = arith.constant 0 : index
    %78 = vector.load %arg10[%c0_44, %c0_45, %c0_46] : memref<2x64x128xf32, #tpu.memory_space<vmem>>, vector<1x64x128xf32>
    %79 = vector.shape_cast %78 : vector<1x64x128xf32> to vector<64x128xf32>
    %80 = vector.broadcast %72 : vector<1x128xf32> to vector<64x128xf32>
    %81 = arith.mulf %79, %80 : vector<64x128xf32>
    %82 = vector.broadcast %77 : vector<1x128xf32> to vector<64x128xf32>
    %83 = arith.addf %81, %82 : vector<64x128xf32>
    %cst_47 = arith.constant 0.000000e+00 : f32
    %84 = vector.broadcast %cst_47 : f32 to vector<64x128xf32>
    %85 = arith.maximumf %83, %84 : vector<64x128xf32>
    %86 = vector.shape_cast %85 : vector<64x128xf32> to vector<8x8x128xf32>
    %c0_48 = arith.constant 0 : index
    %c0_49 = arith.constant 0 : index
    %c0_50 = arith.constant 0 : index
    %c0_51 = arith.constant 0 : index
    %c0_52 = arith.constant 0 : index
    %87 = vector.load %arg9[%c0_48, %c0_49, %c0_50, %c0_51, %c0_52] : memref<1x8x2x8x128xf32, #tpu.memory_space<vmem>>, vector<1x8x1x8x128xf32>
    %88 = vector.shape_cast %87 : vector<1x8x1x8x128xf32> to vector<8x8x128xf32>
    %89 = vector.shape_cast %86 : vector<8x8x128xf32> to vector<1x8x1x8x128xf32>
    tpu.vector_store %arg9[%c0_48, %c0_49, %c0_50, %c0_51, %c0_52], %89 {strides = array<i32>} : memref<1x8x2x8x128xf32, #tpu.memory_space<vmem>>, vector<1x8x1x8x128xf32>,
    %c1_53 = arith.constant 1 : index
    %c0_54 = arith.constant 0 : index
    %c0_55 = arith.constant 0 : index
    %90 = vector.load %arg10[%c1_53, %c0_54, %c0_55] : memref<2x64x128xf32, #tpu.memory_space<vmem>>, vector<1x64x128xf32>
    %91 = vector.shape_cast %90 : vector<1x64x128xf32> to vector<64x128xf32>
    %92 = vector.broadcast %72 : vector<1x128xf32> to vector<64x128xf32>
    %93 = arith.mulf %91, %92 : vector<64x128xf32>
    %94 = vector.broadcast %77 : vector<1x128xf32> to vector<64x128xf32>
    %95 = arith.addf %93, %94 : vector<64x128xf32>
    %cst_56 = arith.constant 0.000000e+00 : f32
    %96 = vector.broadcast %cst_56 : f32 to vector<64x128xf32>
    %97 = arith.maximumf %95, %96 : vector<64x128xf32>
    %98 = vector.shape_cast %97 : vector<64x128xf32> to vector<8x8x128xf32>
    %c0_57 = arith.constant 0 : index
    %c0_58 = arith.constant 0 : index
    %c1_59 = arith.constant 1 : index
    %c0_60 = arith.constant 0 : index
    %c0_61 = arith.constant 0 : index
    %99 = vector.load %arg9[%c0_57, %c0_58, %c1_59, %c0_60, %c0_61] : memref<1x8x2x8x128xf32, #tpu.memory_space<vmem>>, vector<1x8x1x8x128xf32>
    %100 = vector.shape_cast %99 : vector<1x8x1x8x128xf32> to vector<8x8x128xf32>
    %101 = vector.shape_cast %98 : vector<8x8x128xf32> to vector<1x8x1x8x128xf32>
    tpu.vector_store %arg9[%c0_57, %c0_58, %c1_59, %c0_60, %c0_61], %101 {strides = array<i32>} : memref<1x8x2x8x128xf32, #tpu.memory_space<vmem>>, vector<1x8x1x8x128xf32>,
    return
  }
  func.func @transform_0(%arg0: i32) -> (i32, i32, i32, i32) {
    %c0_i32 = arith.constant 0 : i32
    %c0_i32_0 = arith.constant 0 : i32
    %c0_i32_1 = arith.constant 0 : i32
    %c0_i32_2 = arith.constant 0 : i32
    return %arg0, %c0_i32, %c0_i32_0, %c0_i32_1 : i32, i32, i32, i32
  }
  func.func @transform_1(%arg0: i32) -> (i32, i32, i32) {
    %c0_i32 = arith.constant 0 : i32
    %c0_i32_0 = arith.constant 0 : i32
    %c0_i32_1 = arith.constant 0 : i32
    %c0_i32_2 = arith.constant 0 : i32
    return %c0_i32, %c0_i32_0, %c0_i32_1 : i32, i32, i32
  }
  func.func @transform_2(%arg0: i32) -> (i32, i32) {
    %c0_i32 = arith.constant 0 : i32
    %c0_i32_0 = arith.constant 0 : i32
    %c0_i32_1 = arith.constant 0 : i32
    return %c0_i32, %c0_i32_0 : i32, i32
  }
  func.func @transform_3(%arg0: i32) -> (i32, i32) {
    %c0_i32 = arith.constant 0 : i32
    %c0_i32_0 = arith.constant 0 : i32
    %c0_i32_1 = arith.constant 0 : i32
    return %c0_i32, %c0_i32_0 : i32, i32
  }
  func.func @transform_4(%arg0: i32) -> (i32, i32) {
    %c0_i32 = arith.constant 0 : i32
    %c0_i32_0 = arith.constant 0 : i32
    %c0_i32_1 = arith.constant 0 : i32
    return %c0_i32, %c0_i32_0 : i32, i32
  }
  func.func @transform_5(%arg0: i32) -> (i32, i32) {
    %c0_i32 = arith.constant 0 : i32
    %c0_i32_0 = arith.constant 0 : i32
    %c0_i32_1 = arith.constant 0 : i32
    return %c0_i32, %c0_i32_0 : i32, i32
  }
  func.func @transform_6(%arg0: i32) -> (i32, i32) {
    %c0_i32 = arith.constant 0 : i32
    %c0_i32_0 = arith.constant 0 : i32
    %c0_i32_1 = arith.constant 0 : i32
    return %c0_i32, %c0_i32_0 : i32, i32
  }
  func.func @transform_7(%arg0: i32) -> (i32, i32) {
    %c0_i32 = arith.constant 0 : i32
    %c0_i32_0 = arith.constant 0 : i32
    %c0_i32_1 = arith.constant 0 : i32
    return %c0_i32, %c0_i32_0 : i32, i32
  }
  func.func @transform_8(%arg0: i32) -> (i32, i32, i32, i32, i32) {
    %c0_i32 = arith.constant 0 : i32
    %c0_i32_0 = arith.constant 0 : i32
    %c0_i32_1 = arith.constant 0 : i32
    %c0_i32_2 = arith.constant 0 : i32
    %c0_i32_3 = arith.constant 0 : i32
    return %arg0, %c0_i32, %c0_i32_0, %c0_i32_1, %c0_i32_2 : i32, i32, i32, i32, i32
  }
}

</mosaic_0001>

<bundles_post_ra>
// kernel: tpu_custom_call.1
= control target key start
LH: loop header
LB: loop body
LE: loop exit
PB: predicated region body
PF: predicated region fallthrough
CT: control target
= control target key end

     0   :  { %13 = vsyncpa [#allocation4], 0  ;;  %s1970_s0 = inlined_call_operand.vmem [shape: f32[2,10,10,16], index: 0, kind: input, shape index: {}]   ;;  %s1971_s1 = inlined_call_operand.vmem [shape: f32[2,96,128], index: 1, kind: input, shape index: {}]   ;;  %s1972_s2 = inlined_call_operand.vmem [shape: f32[1,128], index: 2, kind: input, shape index: {}]   ;;  %s1973_s3 = inlined_call_operand.vmem [shape: f32[1,128], index: 3, kind: input, shape index: {}]   ;;  %s1974_s4 = inlined_call_operand.vmem [shape: f32[1,128], index: 4, kind: input, shape index: {}]   ;;  %s1975_s5 = inlined_call_operand.vmem [shape: f32[1,32], index: 5, kind: input, shape index: {}]   ;;  %s1976_s6 = inlined_call_operand.vmem [shape: f32[128,32], index: 6, kind: input, shape index: {}]   ;;  %s1977_s7 = inlined_call_operand.vmem [shape: f32[32,128], index: 7, kind: input, shape index: {}]   ;;  %s1978_s8 = inlined_call_operand.hbm [shape: f32[2,8,2,8,128], index: 8, kind: output, shape index: {}]  }
   0x1   :  { %15 = vsyncpa [#allocation4 + $0x1], 0  ;;  %s1379_s27 = smov 0   ;;  %s1381_s28 = smov 0  }
   0x2   :  { %s1383_s29 = smov 0   ;;  %s1385_s30 = smov 0  }
   0x3 LB: > { %s1400_s9 = sadd.s32 4294967295, %s1324_s30   ;;  %s1158_s10 = sadd.s32 4294967294, %s1324_s30   ;;  %s1324_s30 = sphi %s1385_s30, %s1989_s30   ;;  %s1320_s29 = sphi %s1383_s29, %s1988_s29   ;;  %s1316_s28 = sphi %s1381_s28, %s1987_s28   ;;  %s1312_s27 = sphi %s1379_s27, %s1986_s27  }
   0x4   : > { %s1404_s11 = sadd.s32 1, %s1324_s30   ;;  %s201_s12 = sadd.s32 1, %s1320_s29 }
   0x5   : > { %s198_s13 = ssub.s32 %s1324_s30, %s1404_s11  ;;  %p211_p0 = scmp.ne.s32.totalorder %s1320_s29, %s1316_s28 }
   0x6   : > { %p199_p1 = scmp.eq.s32.totalorder %s198_s13, 0  ;;  %p212_p2 = scmp.eq.s32.totalorder %s1400_s9, 1 }
   0x7   : > { %p217_p3 = scmp.ne.s32.totalorder %s1316_s28, %s1312_s27  ;;  %p218_p4 = scmp.eq.s32.totalorder %s1158_s10, 1 }
   0x8   : > { %s1415_s14 = scalar_select %p199_p1, %s1320_s29, %s201_s12  }
   0x9   : > { %p1417_p5 = por %p212_p2, %p211_p0  ;;  %p1421_p6 = por %p218_p4, %p217_p3 }
   0xa   : > { %p1161_p7 = scmp.ge.s32.totalorder %s1324_s30, 1  ;;  %p265_p8 = scmp.lt.s32.totalorder %s1324_s30, 3 }
   0xc   : > { %p266_p9 = pnand %p1161_p7, %p265_p8 }
   0xd   : > { %p299_p10 = scmp.lt.s32.totalorder (!%p266_p9), %s1400_s9, 1  ;;  %s1979_s22 = smov (!%p266_p9), 48  }
   0xe   : > { %269 = sbr.rel (%p266_p9) target bundleno = 868 (0x364), region = 52  ;;  %s1327_s23 = smov (!%p266_p9), 32  }
   0xf   : > { %s1328_s24 = smov (!%p266_p9), 16   ;;  %s1329_s25 = smov (!%p266_p9), 80  }
  0x10   : > { %s1981_s26 = smov (!%p266_p9), 64   ;;  %s1984_s12 = smov (!%p266_p9), 48  }
  0x11   : > { %s296_s19 = sand.u32 (!%p266_p9), 1, %s1316_s28  }
  0x12   : > { %s1081_s13 = scalar_lea.sflag (!%p266_p9), [#allocation4], %s296_s19 }
  0x13   : > { %s300_s17 = scalar_select %p299_p10, %s1400_s9, 1  ;;  %vm365_vm0 = vcmask 1045504   ;;  %vm340_vm1 = vcmask 1046528   ;;  %v602_v56 = vld [vmem:[%s1971_s1 + $0x58] sm:$0xff]  ;;  %v601_v57 = vld [vmem:[%s1971_s1 + $0x50] sm:$0xff]  ;;  %v600_v62 = vld [vmem:[%s1971_s1 + $0x48] sm:$0xff] }
  0x14   : > { %632 = vmatpush.msra.mxu0 %v602_v56  ;;  %vm526_vm2 = vcmask 130048   ;;  %vm535_vm3 = vcmask 261120   ;;  %vm544_vm4 = vcmask 392192   ;;  %vm553_vm5 = vcmask 523264  }
  0x15   : > { %s1212_s18 = smul.u32 160, %s300_s17  ;;  %vm562_vm6 = vcmask 654336   ;;  %vm603_vm7 = vcmask 785408  }
  0x16   : > { %633 = vmatpush.msra.mxu0 %v601_v57 }
  0x17   : > { %s1432_s21 = scalar_lea.vmem %s1970_s0, %s1212_s18 }
  0x18   : > { %v1435_v0 = vld [vmem:[%s1432_s21] sm:$0xff]  ;;  %v305_v1 = vld [vmem:[%s1432_s21 + $0x8] sm:$0x3]  ;;  %v1439_v2 = vld [vmem:[%s1432_s21 + $0x10] sm:$0xff]  ;;  %634 = vmatpush.msra.mxu0 %v600_v62 }
  0x19   : > { %v366_v3 = vrot.slane %v1435_v0, 2  ;;  %v367_v4 = vrot.slane %v305_v1, 2  ;;  %v341_v5 = vrot.slane %v1435_v0, 1  ;;  %v342_v6 = vrot.slane %v305_v1, 1  ;;  %454 = vrot.lane.b32.xlu2 %v1439_v2, %s1979_s22  ;;  %v307_v7 = vld [vmem:[%s1432_s21 + $0x18] sm:$0x3] }
  0x1a   : > { %v369_v10 = vrot.slane %v1439_v2, 2  ;;  %v370_v11 = vrot.slane %v307_v7, 2  ;;  %v344_v12 = vrot.slane %v1439_v2, 1  ;;  %v345_v13 = vrot.slane %v307_v7, 1  ;;  %v1453_v14 = vld [vmem:[%s1432_s21 + $0x20] sm:$0xff]  ;;  %v1471_v24 = vld [vmem:[%s1432_s21 + $0x30] sm:$0xff] }
  0x1b   : > { %v368_v8 = vsel %vm365_vm0, %v366_v3, %v367_v4  ;;  %v343_v9 = vsel %vm340_vm1, %v341_v5, %v342_v6  ;;  %v309_v17 = vld [vmem:[%s1432_s21 + $0x28] sm:$0x3]  ;;  %v347_v18 = vrot.slane %v1453_v14, 1  ;;  %v372_v21 = vrot.slane %v1453_v14, 2  ;;  %v311_v25 = vld [vmem:[%s1432_s21 + $0x38] sm:$0x3] }
  0x1c   : > { %430 = vrot.lane.b32.xlu1 %v368_v8, %s1327_s23  ;;  %406 = vrot.lane.b32.xlu0 %v343_v9, %s1328_s24  ;;  %v371_v15 = vsel %vm365_vm0, %v369_v10, %v370_v11  ;;  %v346_v16 = vsel %vm340_vm1, %v344_v12, %v345_v13  ;;  %v348_v19 = vrot.slane %v309_v17, 1  ;;  %v373_v22 = vrot.slane %v309_v17, 2  ;;  %v1485_v32 = vld [vmem:[%s1432_s21 + $0x40] sm:$0xff]  ;;  %v313_v33 = vld [vmem:[%s1432_s21 + $0x48] sm:$0x3] }
  0x1d   : > { %v375_v26 = vrot.slane %v1471_v24, 2  ;;  %v376_v27 = vrot.slane %v311_v25, 2  ;;  %v350_v28 = vrot.slane %v1471_v24, 1  ;;  %v351_v29 = vrot.slane %v311_v25, 1  ;;  %v315_v40 = vld [vmem:[%s1432_s21 + $0x58] sm:$0x3] }
  0x1e   : > { %v349_v20 = vsel %vm340_vm1, %v347_v18, %v348_v19  ;;  %v374_v23 = vsel %vm365_vm0, %v372_v21, %v373_v22  ;;  %v353_v34 = vrot.slane %v1485_v32, 1  ;;  %v354_v35 = vrot.slane %v313_v33, 1  ;;  %v1499_v41 = vld [vmem:[%s1432_s21 + $0x50] sm:$0xff]  ;;  %v1513_v48 = vld [vmem:[%s1432_s21 + $0x60] sm:$0xff]  ;;  %v317_v49 = vld [vmem:[%s1432_s21 + $0x68] sm:$0x3] }
  0x1f   : > { %v377_v30 = vsel %vm365_vm0, %v375_v26, %v376_v27  ;;  %v352_v31 = vsel %vm340_vm1, %v350_v28, %v351_v29  ;;  %v378_v36 = vrot.slane %v1485_v32, 2  ;;  %v379_v37 = vrot.slane %v313_v33, 2  ;;  %v1533_v58 = vld [vmem:[%s1432_s21 + $0x70] sm:$0xff]  ;;  %v319_v59 = vld [vmem:[%s1432_s21 + $0x78] sm:$0x3]  ;;  %v599_v3 = vld [vmem:[%s1971_s1 + $0x40] sm:$0xff] }
  0x20   : > { %v355_v38 = vsel %vm340_vm1, %v353_v34, %v354_v35  ;;  %v356_v42 = vrot.slane %v1499_v41, 1  ;;  %v357_v43 = vrot.slane %v315_v40, 1  ;;  %v381_v45 = vrot.slane %v1499_v41, 2  ;;  %635 = vmatpush.msra.mxu0 %v599_v3  ;;  %v1183_v5 = vld [vmem:[%s1971_s1 + $0xb8] sm:$0xff]  ;;  %v321_v7 = vld [vmem:[%s1432_s21 + $0x88] sm:$0x3] }
  0x21   : > { %456 = vrot.lane.b32.xlu2 %v1453_v14, %s1979_s22  ;;  %v380_v39 = vsel %vm365_vm0, %v378_v36, %v379_v37  ;;  %v382_v46 = vrot.slane %v315_v40, 2  ;;  %v384_v50 = vrot.slane %v1513_v48, 2  ;;  %v385_v51 = vrot.slane %v317_v49, 2  ;;  %705 = vmatpush.msra.mxu1 %v1183_v5  ;;  %v598_v8 = vld [vmem:[%s1971_s1 + $0x38] sm:$0xff]  ;;  %v1182_v9 = vld [vmem:[%s1971_s1 + $0xb0] sm:$0xff]  ;;  %v1181_v11 = vld [vmem:[%s1971_s1 + $0xa8] sm:$0xff] }
  0x22   : > { %v358_v44 = vsel %vm340_vm1, %v356_v42, %v357_v43  ;;  %v359_v52 = vrot.slane %v1513_v48, 1  ;;  %v360_v53 = vrot.slane %v317_v49, 1  ;;  %v362_v60 = vrot.slane %v1533_v58, 1  ;;  %636 = vmatpush.msra.mxu0 %v598_v8  ;;  %v597_v10 = vld [vmem:[%s1971_s1 + $0x30] sm:$0xff]  ;;  %v1568_v12 = vld [vmem:[%s1432_s21 + $0x80] sm:$0xff]  ;;  %v596_v17 = vld [vmem:[%s1971_s1 + $0x28] sm:$0xff] }
  0x23   : > { %v383_v47 = vsel %vm365_vm0, %v381_v45, %v382_v46  ;;  %v386_v54 = vsel %vm365_vm0, %v384_v50, %v385_v51  ;;  %v363_v61 = vrot.slane %v319_v59, 1  ;;  %v387_v63 = vrot.slane %v1533_v58, 2  ;;  %706 = vmatpush.msra.mxu1 %v1182_v9  ;;  %v1180_v18 = vld [vmem:[%s1971_s1 + $0xa0] sm:$0xff]  ;;  %v1179_v21 = vld [vmem:[%s1971_s1 + $0x98] sm:$0xff]  ;;  %v593_v25 = vld [vmem:[%s1971_s1 + $0x10] sm:$0xff] }
  0x24   : > { %432 = vrot.lane.b32.xlu1 %v371_v15, %s1327_s23  ;;  %408 = vrot.lane.b32.xlu0 %v346_v16, %s1328_s24  ;;  %v361_v55 = vsel %vm340_vm1, %v359_v52, %v360_v53  ;;  %v388_v1 = vrot.slane %v319_v59, 2  ;;  %v595_v19 = vld [vmem:[%s1971_s1 + $0x20] sm:$0xff]  ;;  %v594_v22 = vld [vmem:[%s1971_s1 + $0x18] sm:$0xff]  ;;  %v395_v27 = vrot.slane %v1568_v12, 2  ;;  %v396_v28 = vrot.slane %v321_v7, 2 }
  0x25   : > { %v364_v4 = vsel %vm340_vm1, %v362_v60, %v363_v61  ;;  %637 = vmatpush.msra.mxu0 %v597_v10  ;;  %707 = vmatpush.msra.mxu1 %v1181_v11  ;;  %v1177_v29 = vld [vmem:[%s1971_s1 + $0x88] sm:$0xff]  ;;  %v591_v33 = vld [vmem:[%s1971_s1] sm:$0xff]  ;;  %v1175_v35 = vld [vmem:[%s1971_s1 + $0x78] sm:$0xff] }
  0x26   : > { %v389_v6 = vsel %vm365_vm0, %v387_v63, %v388_v1  ;;  %v397_v34 = vsel %vm365_vm0, %v395_v27, %v396_v28  ;;  %v322_v36 = vld [vmem:[%s1432_s21 + $0x90] sm:$0xff]  ;;  %v323_v37 = vld [vmem:[%s1432_s21 + $0x98] sm:$0x3]  ;;  %v1173_v42 = vld [vmem:[%s1971_s1 + $0x68] sm:$0xff]  ;;  %s1162_s21 = sshll.u32 %s296_s19, 7 }
  0x27   : > { %638 = vmatpush.msra.mxu0 %v596_v17  ;;  %708 = vmatpush.msra.mxu1 %v1180_v18  ;;  %v404_v40 = vrot.slane %v323_v37, 2  ;;  %v400_v43 = vrot.slane %v322_v36, 1 }
  0x29   : > { %502 = vrot.lane.b32.xlu2 %v371_v15, %s1329_s25  ;;  %v392_v15 = vrot.slane %v1568_v12, 1  ;;  %639 = vmatpush.msra.mxu0 %v595_v19 }
  0x2a   : > { %709 = vmatpush.msra.mxu1 %v1179_v21 }
  0x2b   : > { %640 = vmatpush.msra.mxu0 %v594_v22 }
  0x2c   : > { %480 = vrot.lane.b32.xlu1 %v349_v20, %s1981_s26  ;;  %478 = vrot.lane.b32.xlu0 %v346_v16, %s1981_s26  ;;  %v393_v16 = vrot.slane %v321_v7, 1 }
  0x2d   : > { %641 = vmatpush.msra.mxu0 %v593_v25 }
  0x31   : > { %434 = vrot.lane.b32.xlu2 %v374_v23, %s1327_s23 }
  0x34   : > { %504 = vrot.lane.b32.xlu0 %v374_v23, %s1329_s25  ;;  %410 = vrot.lane.b32.xlu1 %v349_v20, %s1328_s24  ;;  %v394_v20 = vsel %vm340_vm1, %v392_v15, %v393_v16  ;;  %v1178_v23 = vld [vmem:[%s1971_s1 + $0x90] sm:$0xff] }
  0x35   : > { %710 = vmatpush.msra.mxu1 %v1178_v23 }
  0x37   : > { %711 = vmatpush.msra.mxu1 %v1177_v29 }
  0x39   : > { %506 = vrot.lane.b32.xlu2 %v377_v30, %s1329_s25 }
  0x3c   : > { %458 = vrot.lane.b32.xlu0 %v1471_v24, %s1979_s22  ;;  %482 = vrot.lane.b32.xlu1 %v352_v31, %s1981_s26 }
  0x41   : > { %460 = vrot.lane.b32.xlu2 %v1485_v32, %s1979_s22 }
  0x44   : > { %412 = vrot.lane.b32.xlu0 %v352_v31, %s1328_s24  ;;  %436 = vrot.lane.b32.xlu1 %v377_v30, %s1327_s23  ;;  %v592_v30 = vld [vmem:[%s1971_s1 + $0x8] sm:$0xff]  ;;  %v1176_v31 = vld [vmem:[%s1971_s1 + $0x80] sm:$0xff] }
  0x45   : > { %642 = vmatpush.msra.mxu0 %v592_v30  ;;  %712 = vmatpush.msra.mxu1 %v1176_v31 }
  0x47   : > { %643 = vmatpush.msra.mxu0 %v591_v33  ;;  %713 = vmatpush.msra.mxu1 %v1175_v35 }
  0x49   : > { %414 = vrot.lane.b32.xlu2 %v355_v38, %s1328_s24 }
  0x4c   : > { %484 = vrot.lane.b32.xlu0 %v355_v38, %s1981_s26  ;;  %508 = vrot.lane.b32.xlu1 %v380_v39, %s1329_s25  ;;  %v403_v38 = vrot.slane %v322_v36, 2 }
  0x4e   : > { %v405_v46 = vsel %vm365_vm0, %v403_v38, %v404_v40 }
  0x51   : > { %486 = vrot.lane.b32.xlu2 %v358_v44, %s1981_s26 }
  0x54   : > { %438 = vrot.lane.b32.xlu0 %v380_v39, %s1327_s23  ;;  %462 = vrot.lane.b32.xlu1 %v1499_v41, %s1979_s22  ;;  %v1174_v39 = vld [vmem:[%s1971_s1 + $0x70] sm:$0xff] }
  0x55   : > { %714 = vmatpush.msra.mxu1 %v1174_v39 }
  0x57   : > { %715 = vmatpush.msra.mxu1 %v1173_v42 }
  0x59   : > { %440 = vrot.lane.b32.xlu2 %v383_v47, %s1327_s23 }
  0x5c   : > { %510 = vrot.lane.b32.xlu0 %v383_v47, %s1329_s25  ;;  %416 = vrot.lane.b32.xlu1 %v358_v44, %s1328_s24  ;;  %v401_v44 = vrot.slane %v323_v37, 1  ;;  %v1172_v47 = vld [vmem:[%s1971_s1 + $0x60] sm:$0xff] }
  0x5d   : > { %716 = vmatpush.msra.mxu1 %v1172_v47 }
  0x5e   : > { %v402_v49 = vsel %vm340_vm1, %v400_v43, %v401_v44 }
  0x61   : > { %512 = vrot.lane.b32.xlu2 %v386_v54, %s1329_s25 }
  0x64   : > { %464 = vrot.lane.b32.xlu0 %v1513_v48, %s1979_s22  ;;  %488 = vrot.lane.b32.xlu1 %v361_v55, %s1981_s26 }
  0x69   : > { %466 = vrot.lane.b32.xlu2 %v1533_v58, %s1979_s22 }
  0x6c   : > { %418 = vrot.lane.b32.xlu0 %v361_v55, %s1328_s24  ;;  %442 = vrot.lane.b32.xlu1 %v386_v54, %s1327_s23 }
  0x71   : > { %420 = vrot.lane.b32.xlu2 %v364_v4, %s1328_s24 }
  0x73   : > { %v1570_v13 = vpop.permute.xlu2 %454 }
  0x74   : > { %490 = vrot.lane.b32.xlu0 %v364_v4, %s1981_s26  ;;  %514 = vrot.lane.b32.xlu1 %v389_v6, %s1329_s25 }
  0x79   : > { %492 = vrot.lane.b32.xlu2 %v394_v20, %s1981_s26 }
  0x7b   : > { %v1598_v26 = vpop.permute.xlu2 %456 }
  0x7c   : > { %444 = vrot.lane.b32.xlu0 %v389_v6, %s1327_s23  ;;  %468 = vrot.lane.b32.xlu1 %v1568_v12, %s1984_s12 }
  0x81   : > { %574 = vrot.lane.b32.xlu2 %v397_v34, %s1327_s23  ;;  %s1912_s23 = scalar_lea.vmem [#allocation3], %s1162_s21  ;;  %s1282_s21 = scalar_lea.hbm %s1978_s8, 256 }
  0x82   : > { %s1093_s20 = sshll.u32 %s1912_s23, 4  ;;  %s1094_s20 = int_to_ptr.vmem [resolvable:$true] %s1093_s20 }
  0x83   : > { %v503_v45 = vpop.permute.xlu2 %502 }
  0x84   : > { %516 = vrot.lane.b32.xlu0 %v397_v34, %s1329_s25  ;;  %571 = vrot.lane.b32.xlu1 %v394_v20, %s1328_s24  ;;  %s1985_s24 = smov 64  }
  0x89   : > { %583 = vrot.lane.b32.xlu2 %v405_v46, %s1329_s25 }
  0x8b   : > { %v435_v52 = vpop.permute.xlu2 %434 }
  0x8c   : > { %577 = vrot.lane.b32.xlu0 %v322_v36, %s1984_s12  ;;  %580 = vrot.lane.b32.xlu1 %v402_v49, %s1985_s24  ;;  %s1211_s24 = sshll.u32 %s1400_s9, 7 }
  0x8d   : > { %s1092_s12 = scalar_lea.hbm %s1978_s8, %s1211_s24 }
  0x8e   : > { %v431_v50 = vpop.permute.xlu1 %430  ;;  %v407_v51 = vpop.permute.xlu0 %406  ;;  %s1095_s10 = sshll.u32 %s1092_s12, 4  ;;  %s1096_s10 = int_to_ptr.hbm [resolvable:$true] %s1095_s10 }
  0x8f   : > { %v527_v55 = vsel %vm526_vm2, %v1435_v0, %v407_v51  ;;  %s1276_s17 = sshra.s32 %s1096_s10, 4  ;;  %s1277_s17 = int_to_ptr.hbm [resolvable:$true] %s1276_s17 }
  0x90   : > { %v536_v57 = vsel %vm535_vm3, %v527_v55, %v431_v50  ;;  %s1278_s18 = scalar_lea.hbm %s1277_s17, 128  ;;  %p1283_p0 = scmp.lt.s32.totalorder %s1277_s17, %s1978_s8 }
  0x91   : > { %v545_v59 = vsel %vm544_vm4, %v536_v57, %v1570_v13  ;;  %p1279_p11 = scmp.ne.s32.totalorder %s1277_s17, %s1278_s18  ;;  %p1284_p1 = scmp.lt.s32.totalorder %s1282_s21, %s1278_s18 }
  0x93   : > { %v507_v56 = vpop.permute.xlu2 %506  ;;  %p1280_p12 = pnand %p1279_p11, %p1417_p5  ;;  %p1285_p2 = por %p1284_p1, %p1283_p0 }
  0x95   : > { %p1281_p13 = pneg %p1280_p12 }
  0x96   : > { %v433_v53 = vpop.permute.xlu1 %432  ;;  %v409_v54 = vpop.permute.xlu0 %408 }
  0x97   : > { %v528_v62 = vsel %vm526_vm2, %v1439_v2, %v409_v54  ;;  %p1286_p3 = pnand %p1285_p2, %p1281_p13 }
  0x98   : > { %v537_v1 = vsel %vm535_vm3, %v528_v62, %v433_v53 }
  0x99   : > { %v546_v4 = vsel %vm544_vm4, %v537_v1, %v1598_v26 }
  0x9b   : > { %v461_v3 = vpop.permute.xlu2 %460 }
  0x9e   : > { %v481_v60 = vpop.permute.xlu1 %480  ;;  %v479_v61 = vpop.permute.xlu0 %478 }
  0x9f   : > { %v554_v63 = vsel %vm553_vm5, %v545_v59, %v479_v61  ;;  %v555_v5 = vsel %vm553_vm5, %v546_v4, %v481_v60 }
  0xa0   : > { %v563_v0 = vsel %vm562_vm6, %v554_v63, %v503_v45 }
  0xa1   : > { %1164 = vmatmul.msk.f32.vlgmr.msra.gmra.mxu0 %vm603_vm7, %v563_v0 }
  0xa3   : > { %v415_v9 = vpop.permute.xlu2 %414 }
  0xa6   : > { %v505_v6 = vpop.permute.xlu0 %504  ;;  %v411_v7 = vpop.permute.xlu1 %410 }
  0xa7   : > { %v564_v8 = vsel %vm562_vm6, %v555_v5, %v505_v6  ;;  %v529_v2 = vsel %vm526_vm2, %v1453_v14, %v411_v7 }
  0xa8   : > { %1184 = vmatmul.msk.f32.vlgmr.msra.gmra.mxu1 %vm603_vm7, %v564_v8  ;;  %v538_v10 = vsel %vm535_vm3, %v529_v2, %v435_v52 }
  0xa9   : > { %1165 = vmatmul.msk.f32.gmra.mxu0 %vm603_vm7, %v564_v8 }
  0xab   : > { %v487_v20 = vpop.permute.xlu2 %486 }
  0xae   : > { %v459_v11 = vpop.permute.xlu0 %458  ;;  %v483_v13 = vpop.permute.xlu1 %482 }
  0xaf   : > { %v547_v15 = vsel %vm544_vm4, %v538_v10, %v459_v11 }
  0xb0   : > { %v556_v16 = vsel %vm553_vm5, %v547_v15, %v483_v13 }
  0xb1   : > { %v565_v17 = vsel %vm562_vm6, %v556_v16, %v507_v56 }
  0xb2   : > { %1166 = vmatmul.msk.f32.gmra.mxu0 %vm603_vm7, %v565_v17  ;;  %1185 = vmatmul.msk.f32.gmra.mxu1 %vm603_vm7, %v565_v17 }
  0xb3   : > { %v441_v28 = vpop.permute.xlu2 %440 }
  0xb6   : > { %v413_v18 = vpop.permute.xlu0 %412  ;;  %v437_v19 = vpop.permute.xlu1 %436 }
  0xb7   : > { %v530_v14 = vsel %vm526_vm2, %v1471_v24, %v413_v18  ;;  %v531_v24 = vsel %vm526_vm2, %v1485_v32, %v415_v9 }
  0xb8   : > { %v539_v21 = vsel %vm535_vm3, %v530_v14, %v437_v19 }
  0xb9   : > { %v548_v22 = vsel %vm544_vm4, %v539_v21, %v461_v3 }
  0xbb   : > { %v513_v34 = vpop.permute.xlu2 %512 }
  0xbe   : > { %v485_v23 = vpop.permute.xlu0 %484  ;;  %v509_v25 = vpop.permute.xlu1 %508 }
  0xbf   : > { %v557_v26 = vsel %vm553_vm5, %v548_v22, %v485_v23 }
  0xc0   : > { %v566_v27 = vsel %vm562_vm6, %v557_v26, %v509_v25 }
  0xc1   : > { %1167 = vmatmul.msk.f32.gmra.mxu0 %vm603_vm7, %v566_v27  ;;  %1186 = vmatmul.msk.f32.gmra.mxu1 %vm603_vm7, %v566_v27  ;;  %v1749_v27 = vld [vmem:[%s1976_s6 + $0x78] sm:$0xff] }
  0xc2   : > { %906 = vmatpush.msrb.mxu0 %v1749_v27 }
  0xc3   : > { %v467_v40 = vpop.permute.xlu2 %466 }
  0xc6   : > { %v439_v29 = vpop.permute.xlu0 %438  ;;  %v463_v30 = vpop.permute.xlu1 %462 }
  0xc7   : > { %v540_v31 = vsel %vm535_vm3, %v531_v24, %v439_v29  ;;  %v1759_v29 = vld [vmem:[%s1976_s6 + $0x70] sm:$0xff] }
  0xc8   : > { %v549_v33 = vsel %vm544_vm4, %v540_v31, %v463_v30  ;;  %907 = vmatpush.msrb.mxu0 %v1759_v29  ;;  %v1767_v30 = vld [vmem:[%s1976_s6 + $0x68] sm:$0xff]  ;;  %v1777_v31 = vld [vmem:[%s1976_s6 + $0x60] sm:$0xff] }
  0xc9   : > { %v558_v35 = vsel %vm553_vm5, %v549_v33, %v487_v20 }
  0xca   : > { %908 = vmatpush.msrb.mxu0 %v1767_v30 }
  0xcb   : > { %v421_v50 = vpop.permute.xlu2 %420 }
  0xcc   : > { %909 = vmatpush.msrb.mxu0 %v1777_v31 }
  0xce   : > { %v511_v36 = vpop.permute.xlu0 %510  ;;  %v417_v37 = vpop.permute.xlu1 %416 }
  0xcf   : > { %v567_v38 = vsel %vm562_vm6, %v558_v35, %v511_v36  ;;  %v532_v39 = vsel %vm526_vm2, %v1499_v41, %v417_v37  ;;  %v1787_v35 = vld [vmem:[%s1976_s6 + $0x58] sm:$0xff]  ;;  %v1796_v37 = vld [vmem:[%s1976_s6 + $0x50] sm:$0xff] }
  0xd0   : > { %1168 = vmatmul.msk.f32.gmra.mxu0 %vm603_vm7, %v567_v38  ;;  %1187 = vmatmul.msk.f32.gmra.mxu1 %vm603_vm7, %v567_v38  ;;  %v541_v32 = vsel %vm535_vm3, %v532_v39, %v441_v28  ;;  %v851_v39 = vld [vmem:[%s1976_s6 + $0x48] sm:$0xff] }
  0xd1   : > { %910 = vmatpush.msrb.mxu0 %v1787_v35 }
  0xd3   : > { %v493_v57 = vpop.permute.xlu2 %492  ;;  %911 = vmatpush.msrb.mxu0 %v1796_v37 }
  0xd5   : > { %912 = vmatpush.msrb.mxu0 %v851_v39 }
  0xd6   : > { %v465_v42 = vpop.permute.xlu0 %464  ;;  %v489_v43 = vpop.permute.xlu1 %488 }
  0xd7   : > { %v550_v44 = vsel %vm544_vm4, %v541_v32, %v465_v42  ;;  %v850_v32 = vld [vmem:[%s1976_s6 + $0x40] sm:$0xff] }
  0xd8   : > { %v559_v45 = vsel %vm553_vm5, %v550_v44, %v489_v43  ;;  %913 = vmatpush.msrb.mxu0 %v850_v32 }
  0xd9   : > { %v568_v46 = vsel %vm562_vm6, %v559_v45, %v513_v34  ;;  %v1331_v34 = vmov 1.0  }
  0xda   : > { %1169 = vmatmul.msk.f32.gmra.mxu0 %vm603_vm7, %v568_v46  ;;  %1188 = vmatmul.msk.f32.gmra.mxu1 %vm603_vm7, %v568_v46  ;;  %v849_v46 = vld [vmem:[%s1976_s6 + $0x38] sm:$0xff] }
  0xdb   : > { %v575_v63 = vpop.permute.xlu2 %574  ;;  %914 = vmatpush.msrb.mxu0 %v849_v46 }
  0xde   : > { %v419_v47 = vpop.permute.xlu0 %418  ;;  %v443_v49 = vpop.permute.xlu1 %442 }
  0xdf   : > { %v533_v41 = vsel %vm526_vm2, %v1513_v48, %v419_v47  ;;  %v534_v48 = vsel %vm526_vm2, %v1533_v58, %v421_v50  ;;  %v848_v50 = vld [vmem:[%s1976_s6 + $0x30] sm:$0xff] }
  0xe0   : > { %v542_v51 = vsel %vm535_vm3, %v533_v41, %v443_v49  ;;  %915 = vmatpush.msrb.mxu0 %v848_v50 }
  0xe1   : > { %v551_v52 = vsel %vm544_vm4, %v542_v51, %v467_v40  ;;  %v847_v51 = vld [vmem:[%s1976_s6 + $0x28] sm:$0xff] }
  0xe2   : > { %916 = vmatpush.msrb.mxu0 %v847_v51 }
  0xe3   : > { %v584_v6 = vpop.permute.xlu2 %583 }
  0xe6   : > { %v491_v53 = vpop.permute.xlu0 %490  ;;  %v515_v54 = vpop.permute.xlu1 %514 }
  0xe7   : > { %v560_v55 = vsel %vm553_vm5, %v551_v52, %v491_v53  ;;  %v846_v53 = vld [vmem:[%s1976_s6 + $0x20] sm:$0xff] }
  0xe8   : > { %v569_v56 = vsel %vm562_vm6, %v560_v55, %v515_v54  ;;  %917 = vmatpush.msrb.mxu0 %v846_v53  ;;  %v845_v55 = vld [vmem:[%s1976_s6 + $0x18] sm:$0xff] }
  0xe9   : > { %1170 = vmatmul.msk.f32.gmra.mxu0 %vm603_vm7, %v569_v56  ;;  %1189 = vmatmul.msk.f32.gmra.mxu1 %vm603_vm7, %v569_v56 }
  0xea   : > { %918 = vmatpush.msrb.mxu0 %v845_v55 }
  0xee   : > { %v445_v59 = vpop.permute.xlu0 %444  ;;  %v469_v60 = vpop.permute.xlu1 %468 }
  0xef   : > { %v543_v61 = vsel %vm535_vm3, %v534_v48, %v445_v59  ;;  %v842_v48 = vld [vmem:[%s1976_s6] sm:$0xff] }
  0xf0   : > { %v552_v62 = vsel %vm544_vm4, %v543_v61, %v469_v60  ;;  %v843_v60 = vld [vmem:[%s1976_s6 + $0x8] sm:$0xff]  ;;  %v861_v61 = vld [vmem:[%s1977_s7 + $0x18] sm:$0xff] }
  0xf1   : > { %v561_v0 = vsel %vm553_vm5, %v552_v62, %v493_v57  ;;  %v844_v57 = vld [vmem:[%s1976_s6 + $0x10] sm:$0xff] }
  0xf2   : > { %919 = vmatpush.msrb.mxu0 %v844_v57  ;;  %v860_v62 = vld [vmem:[%s1977_s7 + $0x10] sm:$0xff] }
  0xf4   : > { %920 = vmatpush.msrb.mxu0 %v843_v60 }
  0xf6   : > { %v517_v1 = vpop.permute.xlu0 %516  ;;  %v572_v3 = vpop.permute.xlu1 %571  ;;  %921 = vmatpush.msrb.mxu0 %v842_v48 }
  0xf7   : > { %v570_v4 = vsel %vm562_vm6, %v561_v0, %v517_v1  ;;  %v586_v5 = vsel %vm526_vm2, %v1568_v12, %v572_v3  ;;  %v862_v1 = vld [vmem:[%s1972_s2] sm:$0x1] }
  0xf8   : > { %1171 = vmatmul.msk.f32.gmra.mxu0 %vm603_vm7, %v570_v4  ;;  %1190 = vmatmul.msk.f32.gmra.mxu1 %vm603_vm7, %v570_v4  ;;  %v587_v58 = vsel %vm535_vm3, %v586_v5, %v575_v63 }
  0xfe   : > { %v578_v7 = vpop.permute.xlu0 %577  ;;  %v581_v8 = vpop.permute.xlu1 %580 }
  0xff   : > { %v588_v2 = vsel %vm544_vm4, %v587_v58, %v578_v7  ;;  %v859_v7 = vld [vmem:[%s1977_s7 + $0x8] sm:$0xff] }
 0x100   : > { %v589_v9 = vsel %vm553_vm5, %v588_v2, %v581_v8  ;;  %v858_v8 = vld [vmem:[%s1977_s7] sm:$0xff] }
 0x101   : > { %v590_v10 = vsel %vm562_vm6, %v589_v9, %v584_v6 }
 0x102   : > { %1191 = vmatmul.msk.f32.gmra.mxu1 %vm603_vm7, %v590_v10 }
 0x11e   : > { %v1711_v11 = vpop.f32.mrf.mxu0 }
 0x11f   : > { %v677_v49 = vmul.f32 %v1711_v11, %v1711_v11 }
 0x125   : > { %v1715_v15 = vpop.f32.mrf.mxu1 }
 0x126   : > { %v1713_v13 = vpop.f32.mrf.mxu0  ;;  %v794_v59 = vmul.f32 %v1715_v15, %v1715_v15 }
 0x127   : > { %v678_v45 = vmul.f32 %v1713_v13, %v1713_v13 }
 0x12f   : > { %v1717_v12 = vpop.f32.mrf.mxu0  ;;  %v1719_v16 = vpop.f32.mrf.mxu1 }
 0x130   : > { %v679_v43 = vmul.f32 %v1717_v12, %v1717_v12  ;;  %v795_v56 = vmul.f32 %v1719_v16, %v1719_v16 }
 0x13e   : > { %v1721_v17 = vpop.f32.mrf.mxu0  ;;  %v1723_v18 = vpop.f32.mrf.mxu1 }
 0x13f   : > { %v680_v40 = vmul.f32 %v1721_v17, %v1721_v17  ;;  %v796_v54 = vmul.f32 %v1723_v18, %v1723_v18 }
 0x14d   : > { %v1725_v19 = vpop.f32.mrf.mxu0  ;;  %v1727_v20 = vpop.f32.mrf.mxu1 }
 0x14e   : > { %v681_v38 = vmul.f32 %v1725_v19, %v1725_v19  ;;  %v797_v52 = vmul.f32 %v1727_v20, %v1727_v20 }
 0x157   : > { %v1729_v14 = vpop.f32.mrf.mxu0  ;;  %v1731_v21 = vpop.f32.mrf.mxu1 }
 0x158   : > { %v682_v36 = vmul.f32 %v1729_v14, %v1729_v14  ;;  %v798_v41 = vmul.f32 %v1731_v21, %v1731_v21 }
 0x166   : > { %v1733_v22 = vpop.f32.mrf.mxu0  ;;  %v1735_v23 = vpop.f32.mrf.mxu1 }
 0x167   : > { %v683_v33 = vmul.f32 %v1733_v22, %v1733_v22  ;;  %v799_v47 = vmul.f32 %v1735_v23, %v1735_v23 }
 0x175   : > { %v1737_v25 = vpop.f32.mrf.mxu0  ;;  %v1740_v26 = vpop.f32.mrf.mxu1 }
 0x176   : > { %782 = vmatpush.msra.mxu3 %v1737_v25  ;;  %v684_v24 = vmul.f32 %v1737_v25, %v1737_v25  ;;  %v800_v44 = vmul.f32 %v1740_v26, %v1740_v26 }
 0x178   : > { %783 = vmatpush.msra.mxu3 %v1733_v22 }
 0x17a   : > { %784 = vmatpush.msra.mxu3 %v1729_v14 }
 0x17c   : > { %785 = vmatpush.msra.mxu3 %v1725_v19 }
 0x17e   : > { %786 = vmatpush.msra.mxu3 %v1721_v17 }
 0x17f   : > { %v1751_v28 = vpop.f32.mrf.mxu1 }
 0x180   : > { %762 = vmatpush.msra.mxu2 %v1751_v28  ;;  %787 = vmatpush.msra.mxu3 %v1717_v12  ;;  %v801_v42 = vmul.f32 %v1751_v28, %v1751_v28 }
 0x182   : > { %763 = vmatpush.msra.mxu2 %v1740_v26  ;;  %788 = vmatpush.msra.mxu3 %v1713_v13 }
 0x184   : > { %764 = vmatpush.msra.mxu2 %v1735_v23  ;;  %789 = vmatpush.msra.mxu3 %v1711_v11 }
 0x185   : > { %1193 = vmatmul.msk.f32.vlgmr.msra.gmra.mxu3 %vm553_vm5, %v1331_v34 }
 0x186   : > { %830 = vmatpush.msrb.mxu3 %v684_v24  ;;  %765 = vmatpush.msra.mxu2 %v1731_v21  ;;  %v927_v24 = vld [vmem:[%s1975_s5] sm:$0x1] }
 0x188   : > { %831 = vmatpush.msrb.mxu3 %v683_v33  ;;  %766 = vmatpush.msra.mxu2 %v1727_v20 }
 0x18a   : > { %832 = vmatpush.msrb.mxu3 %v682_v36  ;;  %767 = vmatpush.msra.mxu2 %v1723_v18 }
 0x18c   : > { %833 = vmatpush.msrb.mxu3 %v681_v38  ;;  %768 = vmatpush.msra.mxu2 %v1719_v16 }
 0x18e   : > { %834 = vmatpush.msrb.mxu3 %v680_v40  ;;  %769 = vmatpush.msra.mxu2 %v1715_v15 }
 0x18f   : > { %1192 = vmatmul.msk.f32.vlgmr.msra.gmra.mxu2 %vm553_vm5, %v1331_v34 }
 0x190   : > { %810 = vmatpush.msrb.mxu2 %v801_v42  ;;  %835 = vmatpush.msrb.mxu3 %v679_v43 }
 0x192   : > { %811 = vmatpush.msrb.mxu2 %v800_v44  ;;  %836 = vmatpush.msrb.mxu3 %v678_v45 }
 0x194   : > { %812 = vmatpush.msrb.mxu2 %v799_v47  ;;  %837 = vmatpush.msrb.mxu3 %v677_v49 }
 0x195   : > { %1195 = vmatmul.msk.f32.vlgmr.msrb.gmra.mxu3 %vm553_vm5, %v1331_v34 }
 0x196   : > { %813 = vmatpush.msrb.mxu2 %v798_v41  ;;  %884 = vmatpush.msra.mxu3 %v1749_v27  ;;  %v993_v41 = vld [vmem:[%s1974_s4] sm:$0x1] }
 0x198   : > { %814 = vmatpush.msrb.mxu2 %v797_v52  ;;  %885 = vmatpush.msra.mxu3 %v1759_v29 }
 0x19a   : > { %815 = vmatpush.msrb.mxu2 %v796_v54  ;;  %886 = vmatpush.msra.mxu3 %v1767_v30 }
 0x19c   : > { %816 = vmatpush.msrb.mxu2 %v795_v56  ;;  %887 = vmatpush.msra.mxu3 %v1777_v31 }
 0x19e   : > { %817 = vmatpush.msrb.mxu2 %v794_v59  ;;  %888 = vmatpush.msra.mxu3 %v1787_v35 }
 0x19f   : > { %1194 = vmatmul.msk.f32.vlgmr.msrb.gmra.mxu2 %vm553_vm5, %v1331_v34 }
 0x1a0   : > { %863 = vmatpush.msra.mxu2 %v1749_v27  ;;  %889 = vmatpush.msra.mxu3 %v1796_v37 }
 0x1a2   : > { %864 = vmatpush.msra.mxu2 %v1759_v29  ;;  %890 = vmatpush.msra.mxu3 %v851_v39 }
 0x1a4   : > { %865 = vmatpush.msra.mxu2 %v1767_v30  ;;  %891 = vmatpush.msra.mxu3 %v850_v32 }
 0x1a6   : > { %866 = vmatpush.msra.mxu2 %v1777_v31  ;;  %892 = vmatpush.msra.mxu3 %v849_v46 }
 0x1a8   : > { %867 = vmatpush.msra.mxu2 %v1787_v35  ;;  %893 = vmatpush.msra.mxu3 %v848_v50 }
 0x1aa   : > { %868 = vmatpush.msra.mxu2 %v1796_v37  ;;  %894 = vmatpush.msra.mxu3 %v847_v51 }
 0x1ac   : > { %869 = vmatpush.msra.mxu2 %v851_v39  ;;  %895 = vmatpush.msra.mxu3 %v846_v53 }
 0x1ae   : > { %870 = vmatpush.msra.mxu2 %v850_v32  ;;  %896 = vmatpush.msra.mxu3 %v845_v55 }
 0x1b0   : > { %871 = vmatpush.msra.mxu2 %v849_v46  ;;  %897 = vmatpush.msra.mxu3 %v844_v57  ;;  %v966_v46 = vld [vmem:[%s1973_s3] sm:$0x1] }
 0x1b2   : > { %872 = vmatpush.msra.mxu2 %v848_v50  ;;  %898 = vmatpush.msra.mxu3 %v843_v60 }
 0x1b4   : > { %873 = vmatpush.msra.mxu2 %v847_v51  ;;  %899 = vmatpush.msra.mxu3 %v842_v48 }
 0x1b6   : > { %874 = vmatpush.msra.mxu2 %v846_v53  ;;  %983 = vmatpush.msrb.mxu3 %v861_v61 }
 0x1b8   : > { %875 = vmatpush.msra.mxu2 %v845_v55  ;;  %984 = vmatpush.msrb.mxu3 %v860_v62 }
 0x1ba   : > { %876 = vmatpush.msra.mxu2 %v844_v57  ;;  %985 = vmatpush.msrb.mxu3 %v859_v7 }
 0x1bc   : > { %877 = vmatpush.msra.mxu2 %v843_v60  ;;  %986 = vmatpush.msrb.mxu3 %v858_v8 }
 0x1be   : > { %878 = vmatpush.msra.mxu2 %v842_v48 }
 0x1c0   : > { %958 = vmatpush.msrb.mxu2 %v861_v61 }
 0x1c2   : > { %959 = vmatpush.msrb.mxu2 %v860_v62 }
 0x1c4   : > { %960 = vmatpush.msrb.mxu2 %v859_v7 }
 0x1c6   : > { %961 = vmatpush.msrb.mxu2 %v858_v8 }
 0x208   : > { %v791_v63 = vpop.f32.mrf.mxu3 }
 0x212   : > { %v771_v0 = vpop.f32.mrf.mxu2 }
 0x213   : > { %v792_v3 = vadd.f32 %v791_v63, %v771_v0 }
 0x215   : > { %v883_v4 = vmul.f32 %v862_v1, %v792_v3  ;;  %879 = vmatmul.f32.vlgmr.msra.gmra.mxu2 %v792_v3 }
 0x217   : > { %900 = vmatmul.f32.vlgmr.msra.gmra.mxu3 %v883_v4 }
 0x218   : > { %v839_v5 = vpop.f32.mrf.mxu3 }
 0x222   : > { %v819_v6 = vpop.f32.mrf.mxu2 }
 0x223   : > { %v840_v58 = vadd.f32 %v839_v5, %v819_v6 }
 0x225   : > { %922 = vmatmul.f32.vlgmr.msrb.gmra.mxu0 %v840_v58 }
 0x298   : > { %v880_v2 = vpop.f32.mrf.mxu2 }
 0x299   : > { %v904_v9 = vmul.f32 0.001953125, %v880_v2 }
 0x29a   : > { %v901_v10 = vpop.f32.mrf.mxu3 }
 0x29b   : > { %1197 = vmatmul.msk.f32.vlgmr.msrb.gmra.mxu3 %vm535_vm3, %v904_v9  ;;  %v905_v27 = vmul.f32 2.0, %v901_v10  ;;  %v929_v33 = vmul.f32 %v904_v9, %v904_v9 }
 0x2a2   : > { %v923_v29 = vpop.f32.mrf.mxu0 }
 0x2a3   : > { %v924_v30 = vadd.f32 %v923_v29, %v905_v27 }
 0x2a5   : > { %v926_v31 = vmul.f32 0.001953125, %v924_v30 }
 0x2a7   : > { %v928_v34 = vadd.f32 %v927_v24, %v926_v31 }
 0x2a9   : > { %v930_v35 = vsub.f32 %v928_v34, %v929_v33 }
 0x2ab   : > { %v931_v36 = vmax.f32 %v930_v35, 0.0 }
 0x2ad   : > { %v932_v37 = vadd.f32 1e-05, %v931_v36 }
 0x2af   : > { %1260 = vrsqrt.f32 %v932_v37  ;;  %vm939_vm9 = vweird.f32 %v932_v37 }
 0x2b5   : > { %v1261_v38 = vpop.eup %1260 }
 0x2b6   : > { %v934_v39 = vmul.f32 %v1261_v38, %v932_v37  ;;  %vm940_vm8 = vweird.f32 %v1261_v38 }
 0x2b7   : > { %vm941_vm10 = vmor %vm939_vm9, %vm940_vm8 }
 0x2b8   : > { %v935_v40 = vmul.f32 %v1261_v38, %v934_v39 }
 0x2ba   : > { %v936_v32 = vmul.f32 0.5, %v935_v40 }
 0x2bc   : > { %v937_v42 = vsub.f32 1.5, %v936_v32 }
 0x2be   : > { %v938_v43 = vmul.f32 %v1261_v38, %v937_v42 }
 0x2c0   : > { %v942_v44 = vsel %vm941_vm10, %v1261_v38, %v938_v43 }
 0x2c1   : > { %1196 = vmatmul.msk.f32.vlgmr.msrb.gmra.mxu2 %vm535_vm3, %v942_v44 }
 0x31e   : > { %v988_v45 = vpop.f32.mrf.mxu3 }
 0x31f   : > { %v991_v49 = vsub.f32 %v862_v1, %v988_v45 }
 0x344   : > { %v963_v47 = vpop.f32.mrf.mxu2 }
 0x345   : > { %v967_v50 = vmul.f32 %v966_v46, %v963_v47 }
 0x347   : > { %v992_v51 = vmul.f32 %v991_v49, %v967_v50  ;;  %v1003_v52 = vperm.slane %v967_v50, 0 }
 0x349   : > { %v994_v53 = vadd.f32 %v993_v41, %v992_v51  ;;  %v1004_v54 = vmul.f32 %v1003_v52, %v1711_v11  ;;  %v1005_v56 = vmul.f32 %v1003_v52, %v1713_v13  ;;  %v1006_v57 = vmul.f32 %v1003_v52, %v1717_v12 }
 0x34a   : > { %v1007_v59 = vmul.f32 %v1003_v52, %v1721_v17  ;;  %v1008_v60 = vmul.f32 %v1003_v52, %v1725_v19  ;;  %v1009_v48 = vmul.f32 %v1003_v52, %v1729_v14  ;;  %v1010_v61 = vmul.f32 %v1003_v52, %v1733_v22 }
 0x34b   : > { %v1013_v55 = vperm.slane %v994_v53, 0  ;;  %v1011_v11 = vmul.f32 %v1003_v52, %v1737_v25  ;;  %v1047_v13 = vmul.f32 %v1003_v52, %v1715_v15  ;;  %v1048_v14 = vmul.f32 %v1003_v52, %v1719_v16 }
 0x34c   : > { %v1049_v15 = vmul.f32 %v1003_v52, %v1723_v18  ;;  %v1050_v8 = vmul.f32 %v1003_v52, %v1727_v20  ;;  %v1051_v9 = vmul.f32 %v1003_v52, %v1731_v21  ;;  %v1052_v29 = vmul.f32 %v1003_v52, %v1735_v23 }
 0x34d   : > { %v1015_v62 = vadd.f32 %v1013_v55, %v1004_v54  ;;  %v1016_v63 = vadd.f32 %v1013_v55, %v1005_v56  ;;  %v1017_v0 = vadd.f32 %v1013_v55, %v1006_v57  ;;  %v1018_v1 = vadd.f32 %v1013_v55, %v1007_v59 }
 0x34e   : > { %v1019_v3 = vadd.f32 %v1013_v55, %v1008_v60  ;;  %v1020_v4 = vadd.f32 %v1013_v55, %v1009_v48  ;;  %v1021_v5 = vadd.f32 %v1013_v55, %v1010_v61  ;;  %v1022_v58 = vadd.f32 %v1013_v55, %v1011_v11 }
 0x34f   : > { %v1023_v12 = vmax.f32 %v1015_v62, 0.0  ;;  %v1024_v6 = vmax.f32 %v1016_v63, 0.0  ;;  %v1025_v17 = vmax.f32 %v1017_v0, 0.0  ;;  %v1026_v19 = vmax.f32 %v1018_v1, 0.0 }
 0x350   : > { %v1027_v7 = vmax.f32 %v1019_v3, 0.0  ;;  %v1055_v22 = vadd.f32 %v1047_v13, %v1013_v55  ;;  %v1028_v25 = vmax.f32 %v1020_v4, 0.0  ;;  %v1056_v2 = vadd.f32 %v1048_v14, %v1013_v55 }
 0x351   : > { %1031 = vst [vmem:[%s1912_s23] sm:$0xff] %v1023_v12  ;;  %v1029_v16 = vmax.f32 %v1021_v5, 0.0  ;;  %v1057_v10 = vadd.f32 %v1049_v15, %v1013_v55  ;;  %v1030_v27 = vmax.f32 %v1022_v58, 0.0  ;;  %v1058_v30 = vadd.f32 %v1050_v8, %v1013_v55 }
 0x352   : > { %1032 = vst [vmem:[%s1912_s23 + $0x10] sm:$0xff] %v1024_v6  ;;  %v1053_v18 = vmul.f32 %v1003_v52, %v1740_v26  ;;  %v1059_v24 = vadd.f32 %v1051_v9, %v1013_v55  ;;  %v1063_v20 = vmax.f32 %v1055_v22, 0.0  ;;  %v1054_v31 = vmul.f32 %v1003_v52, %v1751_v28 }
 0x353   : > { %1033 = vst [vmem:[%s1912_s23 + $0x20] sm:$0xff] %v1025_v17  ;;  %v1060_v21 = vadd.f32 %v1052_v29, %v1013_v55  ;;  %v1064_v33 = vmax.f32 %v1056_v2, 0.0  ;;  %v1065_v23 = vmax.f32 %v1057_v10, 0.0  ;;  %v1066_v35 = vmax.f32 %v1058_v30, 0.0 }
 0x354   : > { %1034 = vst [vmem:[%s1912_s23 + $0x30] sm:$0xff] %v1026_v19  ;;  %v1061_v34 = vadd.f32 %v1053_v18, %v1013_v55  ;;  %v1062_v26 = vadd.f32 %v1054_v31, %v1013_v55  ;;  %v1067_v36 = vmax.f32 %v1059_v24, 0.0 }
 0x355   : > { %1035 = vst [vmem:[%s1912_s23 + $0x40] sm:$0xff] %v1027_v7  ;;  %v1068_v28 = vmax.f32 %v1060_v21, 0.0 }
 0x356   : > { %1036 = vst [vmem:[%s1912_s23 + $0x50] sm:$0xff] %v1028_v25  ;;  %v1069_v37 = vmax.f32 %v1061_v34, 0.0  ;;  %v1070_v38 = vmax.f32 %v1062_v26, 0.0 }
 0x357   : > { %1037 = vst [vmem:[%s1912_s23 + $0x60] sm:$0xff] %v1029_v16 }
 0x358   : > { %1038 = vst [vmem:[%s1912_s23 + $0x70] sm:$0xff] %v1030_v27 }
 0x359   : > { %1198 = vst [vmem:[%s1912_s23 + $0x8] sm:$0xff] %v1063_v20 }
 0x35a   : > { %1199 = vst [vmem:[%s1912_s23 + $0x18] sm:$0xff] %v1064_v33 }
 0x35b   : > { %1200 = vst [vmem:[%s1912_s23 + $0x28] sm:$0xff] %v1065_v23 }
 0x35c   : > { %1201 = vst [vmem:[%s1912_s23 + $0x38] sm:$0xff] %v1066_v35 }
 0x35d   : > { %1202 = vst [vmem:[%s1912_s23 + $0x48] sm:$0xff] %v1067_v36 }
 0x35e   : > { %1203 = vst [vmem:[%s1912_s23 + $0x58] sm:$0xff] %v1068_v28 }
 0x35f   : > { %1204 = vst [vmem:[%s1912_s23 + $0x68] sm:$0xff] %v1069_v37 }
 0x360   : > { %1205 = vst [vmem:[%s1912_s23 + $0x78] sm:$0xff] %v1070_v38 }
 0x361   : > { %1289 = shalt.err (!%p1286_p3)
}
 0x362   : > { %s1332_s19 = smov 128   ;;  %s1333_s23 = smov 8  }
 0x363   : > { %1213 = dma.vmem_to_hbm [thread:$0]  (%p1417_p5), %s1094_s20, 2048, %s1096_s10, %s1081_s13, %s1332_s19, %s1332_s19, %s1333_s23  }
 0x364 PF: > { %p1219_p4 = scmp.ge.s32.totalorder %s1324_s30, 2  ;;  %s1110_s25 = sand.u32 1, %s1312_s27  }
 0x365   : > { %s1111_s12 = scalar_lea.sflag [#allocation4], %s1110_s25 }
 0x366   : > { %p1216_p7 = pnand %p1219_p4, %p1421_p6 }
 0x368   : > { %p1217_p8 = pneg %p1216_p7 }
 0x36a   : > { %1307 = dma.done.wait (%p1217_p8), %s1111_s12, 2048  }
 0x36b   : > { %1309 = vsyncadd (%p1217_p8), %s1111_s12, 4294965248  ;;  %p18_p9 = scmp.ge.s32.totalorder %s1404_s11, 4   ;;  %s1986_s27 = smov %s1316_s28 }
 0x36c   : > { %s1987_s28 = smov %s1320_s29  ;;  %s1988_s29 = smov %s1415_s14 }
 0x36d   : > { %s1989_s30 = smov %s1404_s11  ;;  %20 = sbr.rel (!%p18_p9) target bundleno = 3 (0x3), region = 90 }
 0x372   :  { %1117 = vsyncpa [#allocation4], 1 }
 0x373   :  { %1119 = vsyncpa [#allocation4 + $0x1], 1 }

</bundles_post_ra>
